<compile_context>
chip_gen: v5e
topology: v5e:2x2
jax: 0.10.0
libtpu: 0.0.40
codegen_flags: <defaults>
</compile_context>

<pallas_src>
import jax
import jax.numpy as jnp
from jax.experimental import pallas as pl
from jax.experimental.pallas import tpu as pltpu

LANE = 128  # TPU lane width; hidden/output feature dims are padded to this.
_PREC = jax.lax.Precision.HIGHEST  # exact f32 parity with PyTorch nn.Linear


def _round8(n):
    return -(-n // 8) * 8


def mlp_kernel(x_ref, w1_ref, w_ref, b_ref, o_ref):
    # x_ref : (tile, feat)        native-width input tile
    # w1_ref: (feat, 128)         fc1 weight, output lanes zero-padded
    # w_ref : (3, 128, 128)       fc2..fc4 weights, lane-dense, zero-padded
    # b_ref : (4, 1, 128)         fc1..fc4 biases, zero-padded
    # o_ref : (tile, 128)         lane-dense output slab (cols 0..8 are real)
    b1 = b_ref[0]
    b2 = b_ref[1]
    b3 = b_ref[2]
    b4 = b_ref[3]
    h = jnp.maximum(
        jnp.dot(x_ref[...], w1_ref[...], precision=_PREC,
                preferred_element_type=jnp.float32) + b1, 0.0)
    h = jnp.maximum(
        jnp.dot(h, w_ref[0], precision=_PREC,
                preferred_element_type=jnp.float32) + b2, 0.0)
    h = jnp.maximum(
        jnp.dot(h, w_ref[1], precision=_PREC,
                preferred_element_type=jnp.float32) + b3, 0.0)
    o_ref[...] = jnp.dot(h, w_ref[2], precision=_PREC,
                         preferred_element_type=jnp.float32) + b4


def pack_params(params):
    """params = (w1, b1, ..., w4, b4); weights stored (in, out), biases (1, out).

    Returns (w1_padded, packed_w, packed_b): zero-padded lane-dense f32
    buffers.  Pack ONCE outside the hot loop.  Zero padding in weight rows /
    cols and biases keeps all padded lanes exactly 0 through ReLU and the
    following layers, so the math is unchanged.
    """
    w1, b1, w2, b2, w3, b3, w4, b4 = params
    feat = w1.shape[0]
    w1p = jnp.zeros((feat, LANE), jnp.float32)
    w1p = w1p.at[:, :w1.shape[1]].set(w1.astype(jnp.float32))

    packed_w = jnp.zeros((3, LANE, LANE), jnp.float32)
    for i, w in enumerate((w2, w3, w4)):
        fi, fo = w.shape
        assert fi <= LANE and fo <= LANE
        packed_w = packed_w.at[i, :fi, :fo].set(w.astype(jnp.float32))

    packed_b = jnp.zeros((4, 1, LANE), jnp.float32)
    for i, b in enumerate((b1, b2, b3, b4)):
        packed_b = packed_b.at[i, 0, :b.size].set(
            b.reshape(-1).astype(jnp.float32))
    return w1p, packed_w, packed_b


def nn_forward(x, w1p, packed_w, packed_b, out_dim=9, tm=512):
    """y = fc4(relu(fc3(relu(fc2(relu(fc1(x))))))) using packed params."""
    batch, feat = x.shape
    assert w1p.shape[0] == feat and feat <= LANE

    # --- pick the batch tile -------------------------------------------------
    pb8 = _round8(max(batch, 1))          # sublane-aligned batch
    tile = min(tm, pb8)
    if pb8 >= 16:
        # Guarantee >= 2 grid steps so v7x megacore can shard batch tiles
        # across its 2 TensorCores (no-op on v5e/v6e).
        tile = min(tile, _round8(pl.cdiv(pb8, 2)))
    steps = pl.cdiv(pb8, tile)
    # Near-divisor tile: minimizes over-padding at awkward batch sizes.
    tile = _round8(pl.cdiv(pb8, steps))
    pb = steps * tile

    # x is kept at native feature width in HBM (no 128-lane padding).
    x_pad = jnp.zeros((pb, feat), jnp.float32).at[:batch].set(
        x.astype(jnp.float32))

    out = pl.pallas_call(
        mlp_kernel,
        out_shape=jax.ShapeDtypeStruct((pb, LANE), jnp.float32),
        grid=(pb // tile,),
        in_specs=[
            # x tiles pipelined over the batch grid; last dim == full array dim.
            pl.BlockSpec((tile, feat), lambda i: (i, 0)),
            # Parameters: constant index_map -> single DMA, VMEM-resident.
            pl.BlockSpec((feat, LANE), lambda i: (0, 0)),
            pl.BlockSpec((3, LANE, LANE), lambda i: (0, 0, 0)),
            pl.BlockSpec((4, 1, LANE), lambda i: (0, 0, 0)),
        ],
        out_specs=pl.BlockSpec((tile, LANE), lambda i: (i, 0)),
        compiler_params=pltpu.CompilerParams(
            dimension_semantics=("parallel",)),
    )(x_pad, w1p, packed_w, packed_b)

    return out[:batch, :out_dim]


def init_params(input_size, key):
    """Deterministic init mimicking nn.Linear's uniform(-1/sqrt(in), 1/sqrt(in)).

    Weights stored as (in_features, out_features) so the kernel computes
    y = x @ W + b (equivalent to PyTorch's x @ W.T with W:(out, in))."""
    dims = [(input_size, 50), (50, 40), (40, 20), (20, 9)]
    params = []
    for fan_in, fan_out in dims:
        key, kw, kb = jax.random.split(key, 3)
        bound = 1.0 / jnp.sqrt(float(fan_in))
        w = jax.random.uniform(kw, (fan_in, fan_out), jnp.float32, -bound, bound)
        b = jax.random.uniform(kb, (1, fan_out), jnp.float32, -bound, bound)
        params.extend([w, b])
    return tuple(params)


def reference(x, params):
    w1, b1, w2, b2, w3, b3, w4, b4 = params
    dot = lambda a, w: jnp.dot(a, w, precision=_PREC)
    h = jnp.maximum(dot(x, w1) + b1, 0.0)
    h = jnp.maximum(dot(h, w2) + b2, 0.0)
    h = jnp.maximum(dot(h, w3) + b3, 0.0)
    return dot(h, w4) + b4


if __name__ == "__main__":
    key = jax.random.PRNGKey(0)
    key, kx = jax.random.split(key)

    input_size = 32
    batch = 8
    x = jax.random.normal(kx, (batch, input_size), jnp.float32)

    params = init_params(input_size, key)
    packed = pack_params(params)   # pack once, outside the hot loop

    out = jax.block_until_ready(nn_forward(x, *packed))
    ref = reference(x, params)
    assert out.shape == (batch, 9), out.shape
    assert jnp.allclose(out, ref, atol=1e-4, rtol=1e-4), "mismatch (batch=8)"

    # Second check: awkward batch size exercises the multi-tile grid,
    # the >=2-step megacore split and the near-divisor padding logic.
    key, kx2 = jax.random.split(key)
    x_big = jax.random.normal(kx2, (300, input_size), jnp.float32)
    out_big = jax.block_until_ready(nn_forward(x_big, *packed))
    ref_big = reference(x_big, params)
    assert out_big.shape == (300, 9), out_big.shape
    assert jnp.allclose(out_big, ref_big, atol=1e-4, rtol=1e-4), \
        "mismatch (batch=300)"

    # NOTE: nn.Dropout(0.15) is defined in __init__ but never used in
    # forward(), so no dropout is applied here either.
    print("KERNEL_OK")
</pallas_src>

<mosaic_0001>
module attributes {stable_mosaic.version = 11 : i64} {
  func.func @mlp_kernel(%arg0: i32, %arg1: memref<8x32xf32, #tpu.memory_space<vmem>>, %arg2: memref<32x128xf32, #tpu.memory_space<vmem>>, %arg3: memref<3x128x128xf32, #tpu.memory_space<vmem>>, %arg4: memref<4x1x128xf32, #tpu.memory_space<vmem>>, %arg5: memref<8x128xf32, #tpu.memory_space<vmem>>) attributes {dimension_semantics = [#tpu.dimension_semantics<parallel>], iteration_bounds = array<i64: 1>, scalar_prefetch = 0 : i64, scratch_operands = 0 : i64, tpu.core_type = #tpu.core_type<tc>, window_params = [{transform_indices = @transform_0, window_bounds = array<i64: 8, 32>}, {pipeline_mode = #tpu.pipeline_mode<synchronous>, transform_indices = @transform_1, window_bounds = array<i64: 32, 128>}, {pipeline_mode = #tpu.pipeline_mode<synchronous>, transform_indices = @transform_2, window_bounds = array<i64: 3, 128, 128>}, {pipeline_mode = #tpu.pipeline_mode<synchronous>, transform_indices = @transform_3, window_bounds = array<i64: 4, 1, 128>}, {transform_indices = @transform_4, window_bounds = array<i64: 8, 128>}]} {
    %c0 = arith.constant 0 : index
    %c0_0 = arith.constant 0 : index
    %c0_1 = arith.constant 0 : index
    %0 = vector.load %arg4[%c0, %c0_0, %c0_1] : memref<4x1x128xf32, #tpu.memory_space<vmem>>, vector<1x1x128xf32>
    %1 = vector.shape_cast %0 : vector<1x1x128xf32> to vector<1x128xf32>
    %c1 = arith.constant 1 : index
    %c0_2 = arith.constant 0 : index
    %c0_3 = arith.constant 0 : index
    %2 = vector.load %arg4[%c1, %c0_2, %c0_3] : memref<4x1x128xf32, #tpu.memory_space<vmem>>, vector<1x1x128xf32>
    %3 = vector.shape_cast %2 : vector<1x1x128xf32> to vector<1x128xf32>
    %c2 = arith.constant 2 : index
    %c0_4 = arith.constant 0 : index
    %c0_5 = arith.constant 0 : index
    %4 = vector.load %arg4[%c2, %c0_4, %c0_5] : memref<4x1x128xf32, #tpu.memory_space<vmem>>, vector<1x1x128xf32>
    %5 = vector.shape_cast %4 : vector<1x1x128xf32> to vector<1x128xf32>
    %c3 = arith.constant 3 : index
    %c0_6 = arith.constant 0 : index
    %c0_7 = arith.constant 0 : index
    %6 = vector.load %arg4[%c3, %c0_6, %c0_7] : memref<4x1x128xf32, #tpu.memory_space<vmem>>, vector<1x1x128xf32>
    %7 = vector.shape_cast %6 : vector<1x1x128xf32> to vector<1x128xf32>
    %c0_8 = arith.constant 0 : index
    %c0_9 = arith.constant 0 : index
    %8 = vector.load %arg1[%c0_8, %c0_9] : memref<8x32xf32, #tpu.memory_space<vmem>>, vector<8x32xf32>
    %c0_10 = arith.constant 0 : index
    %c0_11 = arith.constant 0 : index
    %9 = vector.load %arg2[%c0_10, %c0_11] : memref<32x128xf32, #tpu.memory_space<vmem>>, vector<32x128xf32>
    %cst = arith.constant dense<0.000000e+00> : vector<8x128xf32>
    %10 = tpu.matmul %8, %9, %cst {dimension_numbers = #tpu.dot_dimension_numbers<[1], [0], [0], [1], [0, 0, 1, 1], [], []>, precision = #tpu.contract_precision<fp32>} : vector<8x32xf32>, vector<32x128xf32>, vector<8x128xf32> -> vector<8x128xf32>
    %11 = vector.broadcast %1 : vector<1x128xf32> to vector<8x128xf32>
    %12 = arith.addf %10, %11 : vector<8x128xf32>
    %cst_12 = arith.constant 0.000000e+00 : f32
    %13 = vector.broadcast %cst_12 : f32 to vector<8x128xf32>
    %14 = arith.maximumf %12, %13 : vector<8x128xf32>
    %c0_13 = arith.constant 0 : index
    %c0_14 = arith.constant 0 : index
    %c0_15 = arith.constant 0 : index
    %15 = vector.load %arg3[%c0_13, %c0_14, %c0_15] : memref<3x128x128xf32, #tpu.memory_space<vmem>>, vector<1x128x128xf32>
    %16 = vector.shape_cast %15 : vector<1x128x128xf32> to vector<128x128xf32>
    %cst_16 = arith.constant dense<0.000000e+00> : vector<8x128xf32>
    %17 = tpu.matmul %14, %16, %cst_16 {dimension_numbers = #tpu.dot_dimension_numbers<[1], [0], [0], [1], [0, 0, 1, 1], [], []>, precision = #tpu.contract_precision<fp32>} : vector<8x128xf32>, vector<128x128xf32>, vector<8x128xf32> -> vector<8x128xf32>
    %18 = vector.broadcast %3 : vector<1x128xf32> to vector<8x128xf32>
    %19 = arith.addf %17, %18 : vector<8x128xf32>
    %cst_17 = arith.constant 0.000000e+00 : f32
    %20 = vector.broadcast %cst_17 : f32 to vector<8x128xf32>
    %21 = arith.maximumf %19, %20 : vector<8x128xf32>
    %c1_18 = arith.constant 1 : index
    %c0_19 = arith.constant 0 : index
    %c0_20 = arith.constant 0 : index
    %22 = vector.load %arg3[%c1_18, %c0_19, %c0_20] : memref<3x128x128xf32, #tpu.memory_space<vmem>>, vector<1x128x128xf32>
    %23 = vector.shape_cast %22 : vector<1x128x128xf32> to vector<128x128xf32>
    %cst_21 = arith.constant dense<0.000000e+00> : vector<8x128xf32>
    %24 = tpu.matmul %21, %23, %cst_21 {dimension_numbers = #tpu.dot_dimension_numbers<[1], [0], [0], [1], [0, 0, 1, 1], [], []>, precision = #tpu.contract_precision<fp32>} : vector<8x128xf32>, vector<128x128xf32>, vector<8x128xf32> -> vector<8x128xf32>
    %25 = vector.broadcast %5 : vector<1x128xf32> to vector<8x128xf32>
    %26 = arith.addf %24, %25 : vector<8x128xf32>
    %cst_22 = arith.constant 0.000000e+00 : f32
    %27 = vector.broadcast %cst_22 : f32 to vector<8x128xf32>
    %28 = arith.maximumf %26, %27 : vector<8x128xf32>
    %c2_23 = arith.constant 2 : index
    %c0_24 = arith.constant 0 : index
    %c0_25 = arith.constant 0 : index
    %29 = vector.load %arg3[%c2_23, %c0_24, %c0_25] : memref<3x128x128xf32, #tpu.memory_space<vmem>>, vector<1x128x128xf32>
    %30 = vector.shape_cast %29 : vector<1x128x128xf32> to vector<128x128xf32>
    %cst_26 = arith.constant dense<0.000000e+00> : vector<8x128xf32>
    %31 = tpu.matmul %28, %30, %cst_26 {dimension_numbers = #tpu.dot_dimension_numbers<[1], [0], [0], [1], [0, 0, 1, 1], [], []>, precision = #tpu.contract_precision<fp32>} : vector<8x128xf32>, vector<128x128xf32>, vector<8x128xf32> -> vector<8x128xf32>
    %32 = vector.broadcast %7 : vector<1x128xf32> to vector<8x128xf32>
    %33 = arith.addf %31, %32 : vector<8x128xf32>
    %c0_27 = arith.constant 0 : index
    %c0_28 = arith.constant 0 : index
    %34 = vector.load %arg5[%c0_27, %c0_28] : memref<8x128xf32, #tpu.memory_space<vmem>>, vector<8x128xf32>
    tpu.vector_store %arg5[%c0_27, %c0_28], %33 {strides = array<i32>} : memref<8x128xf32, #tpu.memory_space<vmem>>, vector<8x128xf32>,
    return
  }
  func.func @transform_0(%arg0: i32) -> (i32, i32) {
    %c0_i32 = arith.constant 0 : i32
    %c0_i32_0 = arith.constant 0 : i32
    return %arg0, %c0_i32 : i32, i32
  }
  func.func @transform_1(%arg0: i32) -> (i32, i32) {
    %c0_i32 = arith.constant 0 : i32
    %c0_i32_0 = arith.constant 0 : i32
    %c0_i32_1 = arith.constant 0 : i32
    return %c0_i32, %c0_i32_0 : i32, i32
  }
  func.func @transform_2(%arg0: i32) -> (i32, i32, i32) {
    %c0_i32 = arith.constant 0 : i32
    %c0_i32_0 = arith.constant 0 : i32
    %c0_i32_1 = arith.constant 0 : i32
    %c0_i32_2 = arith.constant 0 : i32
    return %c0_i32, %c0_i32_0, %c0_i32_1 : i32, i32, i32
  }
  func.func @transform_3(%arg0: i32) -> (i32, i32, i32) {
    %c0_i32 = arith.constant 0 : i32
    %c0_i32_0 = arith.constant 0 : i32
    %c0_i32_1 = arith.constant 0 : i32
    %c0_i32_2 = arith.constant 0 : i32
    return %c0_i32, %c0_i32_0, %c0_i32_1 : i32, i32, i32
  }
  func.func @transform_4(%arg0: i32) -> (i32, i32) {
    %c0_i32 = arith.constant 0 : i32
    %c0_i32_0 = arith.constant 0 : i32
    return %arg0, %c0_i32 : i32, i32
  }
}

</mosaic_0001>

<bundles_post_ra>
// kernel: tpu_custom_call.1
= control target key start
LH: loop header
LB: loop body
LE: loop exit
PB: predicated region body
PF: predicated region fallthrough
CT: control target
= control target key end

     0   :  { %9 = vsyncpa [#allocation3], 0  ;;  %s2274_s0 = inlined_call_operand.hbm [shape: f32[8,32], index: 0, kind: input, shape index: {}]   ;;  %s2275_s1 = inlined_call_operand.hbm [shape: f32[32,128], index: 1, kind: input, shape index: {}]   ;;  %s2276_s2 = inlined_call_operand.hbm [shape: f32[3,128,128], index: 2, kind: input, shape index: {}]   ;;  %s2277_s3 = inlined_call_operand.hbm [shape: f32[4,1,128], index: 3, kind: input, shape index: {}]   ;;  %s2278_s4 = inlined_call_operand.hbm [shape: f32[8,128], index: 4, kind: output, shape index: {}]  }
   0x1   :  { %10 = vsyncpa [#allocation6], 0 }
   0x2   :  { %11 = vsyncpa [#allocation9], 0  ;;  %s28_s17 = sshll.u32 %s2275_s1, 4  ;;  %s29_s17 = int_to_ptr.hbm [resolvable:$true] %s28_s17 }
   0x3   :  { %12 = vsyncpa [#allocation4], 0  ;;  %s1529_s18 = smov [#allocation5]   ;;  %s18_s22 = sshll.u32 %s2274_s0, 4  ;;  %s19_s22 = int_to_ptr.hbm [resolvable:$true] %s18_s22 }
   0x4   :  { %s30_s19 = sshll.u32 %s1529_s18, 4  ;;  %s1530_s23 = smov 128   ;;  %s31_s19 = int_to_ptr.vmem [resolvable:$true] %s30_s19 }
   0x5   :  { %s1531_s24 = smov 8   ;;  %s1532_s25 = smov [#allocation2]  }
   0x6   :  { %36 = dma.hbm_to_vmem [thread:$0]  %s29_s17, 512, %s31_s19, [#allocation6], %s1530_s23, %s1530_s23, %s1531_s24  }
   0x7   :  { %s20_s26 = sshll.u32 %s1532_s25, 4  ;;  %s41_s29 = sshll.u32 %s2276_s2, 4  ;;  %s21_s26 = int_to_ptr.vmem [resolvable:$true] %s20_s26  ;;  %s42_s29 = int_to_ptr.hbm [resolvable:$true] %s41_s29 }
   0x8   :  { %23 = dma.hbm_to_vmem [thread:$0]  %s19_s22, 128, %s21_s26, [#allocation3]  }
   0x9   :  { %s54_s5 = sshll.u32 %s2277_s3, 4  ;;  %s1533_s6 = smov [#allocation7]   ;;  %s55_s5 = int_to_ptr.hbm [resolvable:$true] %s54_s5 }
   0xa   :  { %s43_s7 = sshll.u32 %s1533_s6, 4  ;;  %s1534_s0 = smov [#allocation8]   ;;  %s44_s7 = int_to_ptr.vmem [resolvable:$true] %s43_s7 }
   0xb   :  { %49 = dma.hbm_to_vmem [thread:$0]  %s42_s29, 6144, %s44_s7, [#allocation6], %s1530_s23, %s1530_s23, %s1531_s24  }
   0xc   :  { %s56_s8 = sshll.u32 %s1534_s0, 4  ;;  %s1535_s9 = smov 16   ;;  %s57_s8 = int_to_ptr.vmem [resolvable:$true] %s56_s8 }
   0xd   :  { %s1536_s10 = smov 1  }
   0xe   :  { %62 = dma.hbm_to_vmem [thread:$0]  %s55_s5, 64, %s57_s8, [#allocation9], %s1535_s9, %s1535_s9, %s1536_s10  }
   0xf   :  { %1521 = dma.done.wait [#allocation3], 128  }
  0x10   :  { %1522 = vsyncadd [#allocation3], 4294967168 }
  0x11   :  { %1523 = dma.done.wait [#allocation6], 6656  }
  0x12   :  { %1524 = vsyncadd [#allocation6], 4294960640 }
  0x13   :  { %1525 = dma.done.wait [#allocation9], 64  }
  0x14   :  { %1526 = vsyncadd [#allocation9], 4294967232  ;;  %vm94_vm0 = vcmask 261120   ;;  %v90_v0 = vld [vmem:[#allocation5 + $0x18] sm:$0xff]  ;;  %v89_v1 = vld [vmem:[#allocation5 + $0x10] sm:$0xff]  ;;  %s1537_s2 = smov [#allocation10]  }
  0x15   :  { %v88_v2 = vld [vmem:[#allocation5 + $0x8] sm:$0xff]  ;;  %v1575_v3 = vand.u32 4294901760, %v90_v0  ;;  %v1577_v4 = vand.u32 4294901760, %v89_v1  ;;  %v87_v6 = vld [vmem:[#allocation5] sm:$0xff]  ;;  %v86_v7 = vld [vmem:[#allocation2] sm:$0xff]  ;;  %s1374_s3 = sshll.u32 %s1537_s2, 4  ;;  %s1375_s3 = int_to_ptr.vmem [resolvable:$true] %s1374_s3 }
  0x16   :  { %v1579_v5 = vand.u32 4294901760, %v88_v2  ;;  %v1581_v8 = vand.u32 4294901760, %v87_v6  ;;  %v96_v9 = vsel %vm94_vm0, %v86_v7, 0  ;;  %v299_v10 = vld [vmem:[#allocation7 + $0x78] sm:$0xff]  ;;  %v298_v11 = vld [vmem:[#allocation7 + $0x70] sm:$0xff]  ;;  %v297_v12 = vld [vmem:[#allocation7 + $0x68] sm:$0xff] }
  0x17   :  { %111 = vmatpush.msra.mxu0 %v1575_v3  ;;  %v1585_v13 = vsub.f32 %v90_v0, %v1575_v3  ;;  %v1587_v14 = vand.u32 4294901760, %v96_v9  ;;  %v1590_v15 = vsub.f32 %v89_v1, %v1577_v4  ;;  %v1598_v18 = vand.u32 4294901760, %v299_v10  ;;  %v296_v37 = vld [vmem:[#allocation7 + $0x60] sm:$0xff]  ;;  %v295_v38 = vld [vmem:[#allocation7 + $0x58] sm:$0xff]  ;;  %v294_v39 = vld [vmem:[#allocation7 + $0x50] sm:$0xff]  ;;  %s1376_s13 = sshll.u32 %s2278_s4, 4  ;;  %s1377_s13 = int_to_ptr.hbm [resolvable:$true] %s1376_s13 }
  0x18   :  { %v1593_v16 = vsub.f32 %v88_v2, %v1579_v5  ;;  %v1596_v17 = vsub.f32 %v87_v6, %v1581_v8  ;;  %v1600_v19 = vand.u32 4294901760, %v298_v11  ;;  %v1602_v20 = vand.u32 4294901760, %v297_v12  ;;  %v293_v43 = vld [vmem:[#allocation7 + $0x48] sm:$0xff]  ;;  %v292_v48 = vld [vmem:[#allocation7 + $0x40] sm:$0xff]  ;;  %v291_v53 = vld [vmem:[#allocation7 + $0x38] sm:$0xff] }
  0x19   :  { %113 = vmatpush.msra.mxu0 %v1577_v4  ;;  %v141_v21 = vand.u32 4294901760, %v1585_v13  ;;  %v1607_v22 = vsub.f32 %v96_v9, %v1587_v14  ;;  %v147_v23 = vand.u32 4294901760, %v1590_v15  ;;  %v1613_v26 = vsub.f32 %v299_v10, %v1598_v18  ;;  %304 = vmatpush.msra.mxu2 %v1598_v18  ;;  %v290_v54 = vld [vmem:[#allocation7 + $0x30] sm:$0xff]  ;;  %v289_v63 = vld [vmem:[#allocation7 + $0x28] sm:$0xff] }
  0x1a   :  { %v153_v24 = vand.u32 4294901760, %v1593_v16  ;;  %v159_v25 = vand.u32 4294901760, %v1596_v17  ;;  %v1616_v27 = vsub.f32 %v298_v11, %v1600_v19  ;;  %v1619_v28 = vsub.f32 %v297_v12, %v1602_v20 }
  0x1b   :  { %115 = vmatpush.msra.mxu0 %v1579_v5  ;;  %v142_v29 = vsub.f32 %v1585_v13, %v141_v21  ;;  %v120_v30 = vand.u32 4294901760, %v1607_v22  ;;  %v148_v31 = vsub.f32 %v1590_v15, %v147_v23  ;;  %v346_v34 = vand.u32 4294901760, %v1613_v26  ;;  %306 = vmatpush.msra.mxu2 %v1600_v19 }
  0x1c   :  { %v154_v32 = vsub.f32 %v1593_v16, %v153_v24  ;;  %v160_v33 = vsub.f32 %v1596_v17, %v159_v25  ;;  %v352_v35 = vand.u32 4294901760, %v1616_v27  ;;  %v358_v36 = vand.u32 4294901760, %v1619_v28 }
  0x1d   :  { %117 = vmatpush.msra.mxu0 %v1581_v8  ;;  %v143_v40 = vand.u32 4294901760, %v142_v29  ;;  %v121_v41 = vsub.f32 %v1607_v22, %v120_v30  ;;  %v149_v42 = vand.u32 4294901760, %v148_v31  ;;  %v347_v45 = vsub.f32 %v1613_v26, %v346_v34  ;;  %308 = vmatpush.msra.mxu2 %v1602_v20 }
  0x1e   :  { %v155_v44 = vand.u32 4294901760, %v154_v32  ;;  %v353_v46 = vsub.f32 %v1616_v27, %v352_v35  ;;  %v359_v47 = vsub.f32 %v1619_v28, %v358_v36  ;;  %v1655_v50 = vand.u32 4294901760, %v296_v37 }
  0x1f   :  { %182 = vmatpush.msrb.mxu0 %v1585_v13  ;;  %144 = vmatpush.msra.mxu1 %v143_v40  ;;  %v122_v49 = vand.u32 4294901760, %v121_v41  ;;  %v1657_v51 = vand.u32 4294901760, %v295_v38  ;;  %v1659_v52 = vand.u32 4294901760, %v294_v39  ;;  %v161_v55 = vand.u32 4294901760, %v160_v33 }
  0x20   :  { %v348_v56 = vand.u32 4294901760, %v347_v45  ;;  %v354_v57 = vand.u32 4294901760, %v353_v46  ;;  %v1662_v58 = vand.u32 4294901760, %v293_v43  ;;  %v1665_v59 = vsub.f32 %v296_v37, %v1655_v50  ;;  %310 = vmatpush.msra.mxu2 %v1655_v50 }
  0x21   :  { %185 = vmatpush.msrb.mxu0 %v1590_v15  ;;  %150 = vmatpush.msra.mxu1 %v149_v42  ;;  %v1668_v60 = vsub.f32 %v295_v38, %v1657_v51  ;;  %v1671_v61 = vsub.f32 %v294_v39, %v1659_v52  ;;  %v1673_v62 = vand.u32 4294901760, %v292_v48  ;;  %v360_v0 = vand.u32 4294901760, %v359_v47  ;;  %v287_v39 = vld [vmem:[#allocation7 + $0x18] sm:$0xff] }
  0x22   :  { %123 = vmatmul.f32.vlgmr.msra.gmra.mxu0 %v122_v49  ;;  %349 = vmatpush.msra.mxu3 %v348_v56  ;;  %v1677_v1 = vsub.f32 %v293_v43, %v1662_v58  ;;  %v1679_v2 = vand.u32 4294901760, %v291_v53  ;;  %v1681_v6 = vand.u32 4294901760, %v290_v54  ;;  %v364_v7 = vand.u32 4294901760, %v1665_v59 }
  0x23   :  { %188 = vmatpush.msrb.mxu0 %v1593_v16  ;;  %156 = vmatpush.msra.mxu1 %v155_v44  ;;  %v370_v9 = vand.u32 4294901760, %v1668_v60  ;;  %v376_v10 = vand.u32 4294901760, %v1671_v61  ;;  %v1688_v11 = vsub.f32 %v292_v48, %v1673_v62  ;;  %v1695_v31 = vand.u32 4294901760, %v289_v63 }
  0x24   :  { %355 = vmatpush.msra.mxu3 %v354_v57  ;;  %v382_v12 = vand.u32 4294901760, %v1677_v1  ;;  %v1693_v29 = vsub.f32 %v291_v53, %v1679_v2  ;;  %v365_v32 = vsub.f32 %v1665_v59, %v364_v7  ;;  %v1711_v13 = vsub.f32 %v290_v54, %v1681_v6  ;;  %312 = vmatpush.msra.mxu2 %v1657_v51 }
  0x25   :  { %191 = vmatpush.msrb.mxu0 %v1596_v17  ;;  %162 = vmatpush.msra.mxu1 %v161_v55  ;;  %v371_v33 = vsub.f32 %v1668_v60, %v370_v9  ;;  %v377_v37 = vsub.f32 %v1671_v61, %v376_v10  ;;  %v388_v38 = vand.u32 4294901760, %v1688_v11  ;;  %v1722_v44 = vsub.f32 %v289_v63, %v1695_v31 }
  0x26   :  { %164 = vmatmul.f32.vlgmr.msra.gmra.mxu1 %v1587_v14  ;;  %361 = vmatpush.msra.mxu3 %v360_v0  ;;  %v366_v40 = vand.u32 4294901760, %v365_v32  ;;  %v383_v42 = vsub.f32 %v1677_v1, %v382_v12  ;;  %v394_v43 = vand.u32 4294901760, %v1693_v29  ;;  %v1728_v15 = vand.u32 4294901760, %v287_v39  ;;  %v285_v0 = vld [vmem:[#allocation7 + $0x8] sm:$0xff] }
  0x27   :  { %240 = vmatpush.msra.mxu0 %v141_v21  ;;  %v288_v21 = vld [vmem:[#allocation7 + $0x20] sm:$0xff]  ;;  %211 = vmatpush.msrb.mxu1 %v1575_v3  ;;  %v372_v41 = vand.u32 4294901760, %v371_v33  ;;  %v389_v46 = vsub.f32 %v1688_v11, %v388_v38  ;;  %v400_v47 = vand.u32 4294901760, %v1711_v13  ;;  %v406_v49 = vand.u32 4294901760, %v1722_v44 }
  0x28   :  { %v1726_v45 = vand.u32 4294901760, %v288_v21  ;;  %367 = vmatpush.msra.mxu3 %v366_v40  ;;  %314 = vmatpush.msra.mxu2 %v1659_v52  ;;  %v384_v16 = vand.u32 4294901760, %v383_v42  ;;  %v1748_v53 = vsub.f32 %v287_v39, %v1728_v15  ;;  %v331_v33 = vand.u32 4294901760, %v285_v0 }
  0x29   :  { %244 = vmatpush.msra.mxu0 %v147_v23  ;;  %213 = vmatpush.msrb.mxu1 %v1577_v4  ;;  %v378_v23 = vand.u32 4294901760, %v377_v37  ;;  %v390_v17 = vand.u32 4294901760, %v389_v46  ;;  %v407_v56 = vsub.f32 %v1722_v44, %v406_v49  ;;  %v284_v37 = vld [vmem:[#allocation7] sm:$0xff] }
  0x2a   :  { %194 = vmatmul.f32.vlgmr.msrb.gmra.mxu0 %v1607_v22  ;;  %v1739_v48 = vsub.f32 %v288_v21, %v1726_v45  ;;  %373 = vmatpush.msra.mxu3 %v372_v41  ;;  %v418_v22 = vand.u32 4294901760, %v1748_v53  ;;  %v429_v39 = vsub.f32 %v285_v0, %v331_v33  ;;  %v333_v40 = vand.u32 4294901760, %v284_v37 }
  0x2b   :  { %248 = vmatpush.msra.mxu0 %v153_v24  ;;  %215 = vmatpush.msrb.mxu1 %v1579_v5  ;;  %v395_v24 = vsub.f32 %v1693_v29, %v394_v43  ;;  %v408_v57 = vand.u32 4294901760, %v407_v56 }
  0x2c   :  { %316 = vmatpush.msra.mxu2 %v1662_v58  ;;  %379 = vmatpush.msra.mxu3 %v378_v23  ;;  %v412_v54 = vand.u32 4294901760, %v1739_v48  ;;  %v419_v63 = vsub.f32 %v1748_v53, %v418_v22  ;;  %v430_v42 = vand.u32 4294901760, %v429_v39  ;;  %v435_v23 = vsub.f32 %v284_v37, %v333_v40 }
  0x2d   :  { %252 = vmatpush.msra.mxu0 %v159_v25  ;;  %217 = vmatpush.msrb.mxu1 %v1581_v8  ;;  %v401_v25 = vsub.f32 %v1711_v13, %v400_v47  ;;  %v396_v55 = vand.u32 4294901760, %v395_v24 }
  0x2e   :  { %221 = vmatmul.f32.vlgmr.msrb.gmra.mxu1 %v120_v30  ;;  %318 = vmatpush.msra.mxu2 %v1673_v62  ;;  %v436_v24 = vand.u32 4294901760, %v435_v23 }
  0x2f   :  { %271 = vmatpush.msra.mxu1 %v1575_v3  ;;  %385 = vmatpush.msra.mxu3 %v384_v16  ;;  %v402_v30 = vand.u32 4294901760, %v401_v25  ;;  %v413_v3 = vsub.f32 %v1739_v48, %v412_v54  ;;  %v431_v16 = vsub.f32 %v429_v39, %v430_v42 }
  0x30   :  { %447 = vmatpush.msrb.mxu0 %v1613_v26  ;;  %320 = vmatpush.msra.mxu2 %v1679_v2  ;;  %v437_v25 = vsub.f32 %v435_v23, %v436_v24 }
  0x31   :  { %273 = vmatpush.msra.mxu1 %v1577_v4  ;;  %391 = vmatpush.msra.mxu3 %v390_v17  ;;  %v414_v4 = vand.u32 4294901760, %v413_v3  ;;  %v432_v17 = vand.u32 4294901760, %v431_v16 }
  0x32   :  { %254 = vmatmul.f32.vlgmr.msra.gmra.mxu0 %v1587_v14  ;;  %322 = vmatpush.msra.mxu2 %v1681_v6 }
  0x33   :  { %275 = vmatpush.msra.mxu1 %v1579_v5  ;;  %450 = vmatpush.msrb.mxu0 %v1616_v27  ;;  %v420_v5 = vand.u32 4294901760, %v419_v63 }
  0x34   :  { %397 = vmatpush.msra.mxu3 %v396_v55  ;;  %324 = vmatpush.msra.mxu2 %v1695_v31  ;;  %v438_v55 = vand.u32 4294901760, %v437_v25  ;;  %v649_v25 = vld [vmem:[#allocation7 + $0x98] sm:$0xff] }
  0x35   :  { %277 = vmatpush.msra.mxu1 %v1581_v8  ;;  %453 = vmatpush.msrb.mxu0 %v1619_v28  ;;  %v286_v8 = vld [vmem:[#allocation7 + $0x10] sm:$0xff] }
  0x36   :  { %279 = vmatmul.f32.vlgmr.msra.gmra.mxu1 %v1587_v14  ;;  %403 = vmatpush.msra.mxu3 %v402_v30  ;;  %v329_v14 = vand.u32 4294901760, %v286_v8 }
  0x37   :  { %500 = vmatpush.msrb.mxu1 %v1598_v18  ;;  %456 = vmatpush.msrb.mxu0 %v1665_v59 }
  0x38   :  { %409 = vmatpush.msra.mxu3 %v408_v57  ;;  %326 = vmatpush.msra.mxu2 %v1726_v45  ;;  %v423_v32 = vsub.f32 %v286_v8, %v329_v14 }
  0x39   :  { %502 = vmatpush.msrb.mxu1 %v1600_v19  ;;  %459 = vmatpush.msrb.mxu0 %v1668_v60  ;;  %v658_v60 = vld [vmem:[#allocation7 + $0xe0] sm:$0xff] }
  0x3a   :  { %415 = vmatpush.msra.mxu3 %v414_v4  ;;  %328 = vmatpush.msra.mxu2 %v1728_v15  ;;  %v424_v21 = vand.u32 4294901760, %v423_v32  ;;  %v653_v4 = vld [vmem:[#allocation7 + $0xb8] sm:$0xff] }
  0x3b   :  { %504 = vmatpush.msrb.mxu1 %v1602_v20  ;;  %462 = vmatpush.msrb.mxu0 %v1671_v61  ;;  %v657_v61 = vld [vmem:[#allocation7 + $0xd8] sm:$0xff] }
  0x3c   :  { %421 = vmatpush.msra.mxu3 %v420_v5  ;;  %330 = vmatpush.msra.mxu2 %v329_v14  ;;  %v425_v41 = vsub.f32 %v423_v32, %v424_v21  ;;  %v652_v5 = vld [vmem:[#allocation7 + $0xb0] sm:$0xff] }
  0x3d   :  { %506 = vmatpush.msrb.mxu1 %v1655_v50  ;;  %465 = vmatpush.msrb.mxu0 %v1677_v1 }
  0x3e   :  { %332 = vmatpush.msra.mxu2 %v331_v33  ;;  %v426_v46 = vand.u32 4294901760, %v425_v41 }
  0x3f   :  { %508 = vmatpush.msrb.mxu1 %v1657_v51  ;;  %468 = vmatpush.msrb.mxu0 %v1688_v11 }
  0x40   :  { %334 = vmatpush.msra.mxu2 %v333_v40  ;;  %427 = vmatpush.msra.mxu3 %v426_v46 }
  0x41   :  { %510 = vmatpush.msrb.mxu1 %v1659_v52  ;;  %471 = vmatpush.msrb.mxu0 %v1693_v29 }
  0x42   :  { %541 = vmatpush.msrb.mxu2 %v346_v34  ;;  %433 = vmatpush.msra.mxu3 %v432_v17 }
  0x43   :  { %512 = vmatpush.msrb.mxu1 %v1662_v58  ;;  %474 = vmatpush.msrb.mxu0 %v1711_v13 }
  0x44   :  { %545 = vmatpush.msrb.mxu2 %v352_v35  ;;  %439 = vmatpush.msra.mxu3 %v438_v55  ;;  %v661_v35 = vld [vmem:[#allocation7 + $0xf8] sm:$0xff] }
  0x45   :  { %514 = vmatpush.msrb.mxu1 %v1673_v62  ;;  %477 = vmatpush.msrb.mxu0 %v1722_v44 }
  0x46   :  { %549 = vmatpush.msrb.mxu2 %v358_v36  ;;  %608 = vmatpush.msrb.mxu3 %v1598_v18  ;;  %v1397_v18 = vld [vmem:[#allocation8] ss:$0 sm:$0xff]  ;;  %v660_v36 = vld [vmem:[#allocation7 + $0xf0] sm:$0xff] }
  0x47   :  { %516 = vmatpush.msrb.mxu1 %v1679_v2  ;;  %480 = vmatpush.msrb.mxu0 %v1739_v48 }
  0x48   :  { %553 = vmatpush.msrb.mxu2 %v364_v7  ;;  %610 = vmatpush.msrb.mxu3 %v1600_v19 }
  0x49   :  { %518 = vmatpush.msrb.mxu1 %v1681_v6  ;;  %483 = vmatpush.msrb.mxu0 %v1748_v53 }
  0x4a   :  { %557 = vmatpush.msrb.mxu2 %v370_v9  ;;  %612 = vmatpush.msrb.mxu3 %v1602_v20  ;;  %v655_v9 = vld [vmem:[#allocation7 + $0xc8] sm:$0xff] }
  0x4b   :  { %520 = vmatpush.msrb.mxu1 %v1695_v31  ;;  %486 = vmatpush.msrb.mxu0 %v423_v32 }
  0x4c   :  { %561 = vmatpush.msrb.mxu2 %v376_v10  ;;  %614 = vmatpush.msrb.mxu3 %v1655_v50  ;;  %v659_v50 = vld [vmem:[#allocation7 + $0xe8] sm:$0xff]  ;;  %v654_v10 = vld [vmem:[#allocation7 + $0xc0] sm:$0xff] }
  0x4d   :  { %522 = vmatpush.msrb.mxu1 %v1726_v45  ;;  %489 = vmatpush.msrb.mxu0 %v429_v39  ;;  %v1849_v59 = vand.u32 4294901760, %v659_v50  ;;  %v1878_v44 = vand.u32 4294901760, %v654_v10  ;;  %v650_v39 = vld [vmem:[#allocation7 + $0xa0] sm:$0xff] }
  0x4e   :  { %565 = vmatpush.msrb.mxu2 %v382_v12  ;;  %616 = vmatpush.msrb.mxu3 %v1657_v51 }
  0x4f   :  { %524 = vmatpush.msrb.mxu1 %v1728_v15  ;;  %492 = vmatpush.msrb.mxu0 %v435_v23  ;;  %v1864_v29 = vsub.f32 %v659_v50, %v1849_v59  ;;  %v1901_v63 = vsub.f32 %v654_v10, %v1878_v44  ;;  %v1914_v23 = vand.u32 4294901760, %v652_v5 }
  0x50   :  { %569 = vmatpush.msrb.mxu2 %v388_v38  ;;  %618 = vmatpush.msrb.mxu3 %v1659_v52  ;;  %v1845_v52 = vand.u32 4294901760, %v661_v35 }
  0x51   :  { %526 = vmatpush.msrb.mxu1 %v329_v14  ;;  %v720_v48 = vand.u32 4294901760, %v1864_v29 }
  0x52   :  { %573 = vmatpush.msrb.mxu2 %v394_v43  ;;  %620 = vmatpush.msrb.mxu3 %v1662_v58  ;;  %v1847_v58 = vand.u32 4294901760, %v660_v36  ;;  %v1858_v11 = vsub.f32 %v661_v35, %v1845_v52 }
  0x53   :  { %528 = vmatpush.msrb.mxu1 %v331_v33  ;;  %666 = vmatpush.msra.mxu0 %v1845_v52 }
  0x54   :  { %577 = vmatpush.msrb.mxu2 %v400_v47  ;;  %622 = vmatpush.msrb.mxu3 %v1673_v62  ;;  %v656_v62 = vld [vmem:[#allocation7 + $0xd0] sm:$0xff]  ;;  %v1861_v12 = vsub.f32 %v660_v36, %v1847_v58  ;;  %v1939_v36 = vand.u32 4294901760, %v649_v25 }
  0x55   :  { %530 = vmatpush.msrb.mxu1 %v333_v40  ;;  %v1855_v7 = vand.u32 4294901760, %v656_v62  ;;  %668 = vmatpush.msra.mxu0 %v1847_v58 }
  0x56   :  { %581 = vmatpush.msrb.mxu2 %v406_v49  ;;  %624 = vmatpush.msrb.mxu3 %v1679_v2  ;;  %v1851_v2 = vand.u32 4294901760, %v658_v60  ;;  %v714_v47 = vand.u32 4294901760, %v1861_v12 }
  0x57   :  { %v1876_v43 = vsub.f32 %v656_v62, %v1855_v7  ;;  %670 = vmatpush.msra.mxu0 %v1849_v59 }
  0x58   :  { %585 = vmatpush.msrb.mxu2 %v412_v54  ;;  %626 = vmatpush.msrb.mxu3 %v1681_v6  ;;  %v1853_v6 = vand.u32 4294901760, %v657_v61  ;;  %v1870_v38 = vsub.f32 %v658_v60, %v1851_v2  ;;  %v715_v56 = vsub.f32 %v1861_v12, %v714_v47 }
  0x59   :  { %v738_v57 = vand.u32 4294901760, %v1876_v43  ;;  %672 = vmatpush.msra.mxu0 %v1851_v2 }
  0x5a   :  { %589 = vmatpush.msrb.mxu2 %v418_v22  ;;  %628 = vmatpush.msrb.mxu3 %v1695_v31  ;;  %v1867_v31 = vand.u32 4294901760, %v655_v9  ;;  %v1873_v13 = vsub.f32 %v657_v61, %v1853_v6  ;;  %v726_v49 = vand.u32 4294901760, %v1870_v38  ;;  %v721_v22 = vsub.f32 %v1864_v29, %v720_v48 }
  0x5b   :  { %v716_v0 = vand.u32 4294901760, %v715_v56  ;;  %674 = vmatpush.msra.mxu0 %v1853_v6  ;;  %v739_v16 = vsub.f32 %v1876_v43, %v738_v57 }
  0x5c   :  { %593 = vmatpush.msrb.mxu2 %v424_v21  ;;  %630 = vmatpush.msrb.mxu3 %v1726_v45  ;;  %v732_v53 = vand.u32 4294901760, %v1873_v13  ;;  %v1897_v30 = vsub.f32 %v655_v9, %v1867_v31  ;;  %v727_v32 = vsub.f32 %v1870_v38, %v726_v49 }
  0x5d   :  { %676 = vmatpush.msra.mxu0 %v1855_v7 }
  0x5e   :  { %597 = vmatpush.msrb.mxu2 %v430_v42  ;;  %632 = vmatpush.msrb.mxu3 %v1728_v15  ;;  %v708_v15 = vand.u32 4294901760, %v1858_v11  ;;  %v733_v21 = vsub.f32 %v1873_v13, %v732_v53  ;;  %v744_v41 = vand.u32 4294901760, %v1897_v30  ;;  %v1912_v42 = vand.u32 4294901760, %v653_v4 }
  0x5f   :  { %v728_v55 = vand.u32 4294901760, %v727_v32  ;;  %678 = vmatpush.msra.mxu0 %v1867_v31 }
  0x60   :  { %601 = vmatpush.msrb.mxu2 %v436_v24  ;;  %634 = vmatpush.msrb.mxu3 %v329_v14  ;;  %v709_v54 = vsub.f32 %v1858_v11, %v708_v15  ;;  %v750_v24 = vand.u32 4294901760, %v1901_v63 }
  0x61   :  { %680 = vmatpush.msra.mxu0 %v1878_v44 }
  0x62   :  { %636 = vmatpush.msrb.mxu3 %v331_v33  ;;  %v710_v14 = vand.u32 4294901760, %v709_v54  ;;  %v651_v33 = vld [vmem:[#allocation7 + $0xa8] sm:$0xff]  ;;  %v751_v60 = vsub.f32 %v1901_v63, %v750_v24  ;;  %v1956_v54 = vsub.f32 %v649_v25, %v1939_v36 }
  0x63   :  { %v1920_v17 = vand.u32 4294901760, %v651_v33  ;;  %682 = vmatpush.msra.mxu0 %v1912_v42  ;;  %v647_v25 = vld [vmem:[#allocation7 + $0x88] sm:$0xff] }
  0x64   :  { %638 = vmatpush.msrb.mxu3 %v333_v40  ;;  %711 = vmatpush.msra.mxu1 %v710_v14  ;;  %v722_v40 = vand.u32 4294901760, %v721_v22  ;;  %v752_v22 = vand.u32 4294901760, %v751_v60 }
  0x65   :  { %v1937_v35 = vsub.f32 %v651_v33, %v1920_v17  ;;  %684 = vmatpush.msra.mxu0 %v1914_v23 }
  0x66   :  { %717 = vmatpush.msra.mxu1 %v716_v0  ;;  %v780_v0 = vand.u32 4294901760, %v1956_v54 }
  0x67   :  { %686 = vmatpush.msra.mxu0 %v1920_v17 }
  0x68   :  { %723 = vmatpush.msra.mxu1 %v722_v40 }
  0x6a   :  { %729 = vmatpush.msra.mxu1 %v728_v55 }
  0x9f   :  { %v124_v19 = vpop.f32.mrf.mxu0 }
  0xa0   :  { %v125_v20 = vadd.f32 %v1397_v18, %v124_v19  ;;  %v1923_v18 = vsub.f32 %v653_v4, %v1912_v42  ;;  %v1927_v19 = vsub.f32 %v652_v5, %v1914_v23 }
  0xa2   :  { %v762_v61 = vand.u32 4294901760, %v1927_v19 }
  0xa3   :  { %v165_v26 = vpop.f32.mrf.mxu1 }
  0xa4   :  { %v166_v27 = vadd.f32 %v165_v26, %v125_v20  ;;  %v1929_v20 = vand.u32 4294901760, %v650_v39 }
  0xa6   :  { %v1947_v62 = vsub.f32 %v650_v39, %v1929_v20  ;;  %688 = vmatpush.msra.mxu0 %v1929_v20 }
  0xa7   :  { %v195_v28 = vpop.f32.mrf.mxu0 }
  0xa8   :  { %v196_v34 = vadd.f32 %v195_v28, %v166_v27  ;;  %v734_v27 = vand.u32 4294901760, %v733_v21  ;;  %v745_v28 = vsub.f32 %v1897_v30, %v744_v41  ;;  %v774_v4 = vand.u32 4294901760, %v1947_v62  ;;  %690 = vmatpush.msra.mxu0 %v1939_v36 }
  0xa9   :  { %v781_v21 = vsub.f32 %v1956_v54, %v780_v0 }
  0xaa   :  { %735 = vmatpush.msra.mxu1 %v734_v27  ;;  %v746_v9 = vand.u32 4294901760, %v745_v28  ;;  %v775_v33 = vsub.f32 %v1947_v62, %v774_v4  ;;  %v646_v27 = vld [vmem:[#allocation7 + $0x80] sm:$0xff] }
  0xab   :  { %v222_v51 = vpop.f32.mrf.mxu1  ;;  %v782_v40 = vand.u32 4294901760, %v781_v21  ;;  %v1015_v21 = vld [vmem:[#allocation7 + $0x138] sm:$0xff] }
  0xac   :  { %v223_v1 = vadd.f32 %v222_v51, %v196_v34  ;;  %v756_v34 = vand.u32 4294901760, %v1923_v18  ;;  %v740_v51 = vand.u32 4294901760, %v739_v16  ;;  %v776_v39 = vand.u32 4294901760, %v775_v33 }
  0xae   :  { %v757_v10 = vsub.f32 %v1923_v18, %v756_v34  ;;  %741 = vmatpush.msra.mxu1 %v740_v51  ;;  %v695_v51 = vand.u32 4294901760, %v646_v27 }
  0xaf   :  { %v255_v45 = vpop.f32.mrf.mxu0 }
  0xb0   :  { %v256_v3 = vadd.f32 %v255_v45, %v223_v1  ;;  %v768_v45 = vand.u32 4294901760, %v1937_v35  ;;  %747 = vmatpush.msra.mxu1 %v746_v9  ;;  %v797_v9 = vsub.f32 %v646_v27, %v695_v51 }
  0xb2   :  { %v769_v14 = vsub.f32 %v1937_v35, %v768_v45  ;;  %753 = vmatpush.msra.mxu1 %v752_v22  ;;  %v798_v22 = vand.u32 4294901760, %v797_v9 }
  0xb3   :  { %v280_v8 = vpop.f32.mrf.mxu1 }
  0xb4   :  { %v281_v37 = vadd.f32 %v280_v8, %v256_v3  ;;  %v763_v3 = vsub.f32 %v1927_v19, %v762_v61  ;;  %v758_v8 = vand.u32 4294901760, %v757_v10 }
  0xb6   :  { %v283_v46 = vmax.f32 %v281_v37, 0.0  ;;  %v764_v32 = vand.u32 4294901760, %v763_v3  ;;  %759 = vmatpush.msra.mxu1 %v758_v8  ;;  %v770_v37 = vand.u32 4294901760, %v769_v14 }
  0xb8   :  { %v335_v26 = vand.u32 4294901760, %v283_v46  ;;  %765 = vmatpush.msra.mxu1 %v764_v32 }
  0xba   :  { %v336_v50 = vsub.f32 %v283_v46, %v335_v26  ;;  %441 = vmatmul.f32.vlgmr.msra.gmra.mxu3 %v335_v26  ;;  %771 = vmatpush.msra.mxu1 %v770_v37  ;;  %v648_v46 = vld [vmem:[#allocation7 + $0x90] sm:$0xff]  ;;  %v1016_v37 = vld [vmem:[#allocation7 + $0x140] sm:$0xff] }
  0xbb   :  { %862 = vmatpush.msra.mxu3 %v1845_v52  ;;  %v691_v16 = vand.u32 4294901760, %v648_v46 }
  0xbc   :  { %495 = vmatmul.f32.vlgmr.msrb.gmra.mxu0 %v336_v50  ;;  %v337_v1 = vand.u32 4294901760, %v336_v50  ;;  %777 = vmatpush.msra.mxu1 %v776_v39  ;;  %v1014_v39 = vld [vmem:[#allocation7 + $0x130] sm:$0xff] }
  0xbd   :  { %864 = vmatpush.msra.mxu3 %v1847_v58  ;;  %v785_v55 = vsub.f32 %v648_v46, %v691_v16  ;;  %692 = vmatpush.msra.mxu0 %v691_v16 }
  0xbe   :  { %534 = vmatmul.f32.vlgmr.msrb.gmra.mxu1 %v337_v1  ;;  %v338_v56 = vsub.f32 %v336_v50, %v337_v1 }
  0xbf   :  { %866 = vmatpush.msra.mxu3 %v1849_v59  ;;  %783 = vmatpush.msra.mxu1 %v782_v40  ;;  %v786_v28 = vand.u32 4294901760, %v785_v55 }
  0xc0   :  { %v339_v5 = vand.u32 4294901760, %v338_v56 }
  0xc1   :  { %868 = vmatpush.msra.mxu3 %v1851_v2  ;;  %v787_v60 = vsub.f32 %v785_v55, %v786_v28 }
  0xc2   :  { %340 = vmatmul.f32.vlgmr.msra.gmra.mxu2 %v339_v5  ;;  %640 = vmatmul.f32.vlgmr.msrb.gmra.mxu3 %v335_v26  ;;  %v799_v5 = vsub.f32 %v797_v9, %v798_v22 }
  0xc3   :  { %809 = vmatpush.msra.mxu2 %v1858_v11  ;;  %870 = vmatpush.msra.mxu3 %v1853_v6  ;;  %v788_v10 = vand.u32 4294901760, %v787_v60  ;;  %v1021_v11 = vld [vmem:[#allocation7 + $0x168] sm:$0xff]  ;;  %v2104_v60 = vand.u32 4294901760, %v1015_v21 }
  0xc4   :  { %v800_v8 = vand.u32 4294901760, %v799_v5 }
  0xc5   :  { %812 = vmatpush.msra.mxu2 %v1861_v12  ;;  %872 = vmatpush.msra.mxu3 %v1855_v7 }
  0xc6   :  { %789 = vmatpush.msra.mxu1 %v788_v10 }
  0xc7   :  { %815 = vmatpush.msra.mxu2 %v1864_v29  ;;  %874 = vmatpush.msra.mxu3 %v1867_v31 }
  0xc9   :  { %818 = vmatpush.msra.mxu2 %v1870_v38  ;;  %876 = vmatpush.msra.mxu3 %v1878_v44  ;;  %v1020_v38 = vld [vmem:[#allocation7 + $0x160] sm:$0xff] }
  0xca   :  { %603 = vmatmul.f32.vlgmr.msrb.gmra.mxu2 %v335_v26  ;;  %v693_v26 = vand.u32 4294901760, %v647_v25 }
  0xcb   :  { %821 = vmatpush.msra.mxu2 %v1873_v13  ;;  %878 = vmatpush.msra.mxu3 %v1912_v42  ;;  %v1019_v13 = vld [vmem:[#allocation7 + $0x158] sm:$0xff] }
  0xcc   :  { %v791_v50 = vsub.f32 %v647_v25, %v693_v26  ;;  %694 = vmatpush.msra.mxu0 %v693_v26  ;;  %v1013_v25 = vld [vmem:[#allocation7 + $0x128] sm:$0xff] }
  0xcd   :  { %824 = vmatpush.msra.mxu2 %v1876_v43  ;;  %880 = vmatpush.msra.mxu3 %v1914_v23  ;;  %v1018_v43 = vld [vmem:[#allocation7 + $0x150] sm:$0xff] }
  0xce   :  { %v792_v1 = vand.u32 4294901760, %v791_v50  ;;  %696 = vmatpush.msra.mxu0 %v695_v51 }
  0xcf   :  { %827 = vmatpush.msra.mxu2 %v1897_v30  ;;  %882 = vmatpush.msra.mxu3 %v1920_v17 }
  0xd0   :  { %903 = vmatpush.msrb.mxu0 %v708_v15  ;;  %v793_v56 = vsub.f32 %v791_v50, %v792_v1  ;;  %v2046_v15 = vand.u32 4294901760, %v1020_v38 }
  0xd1   :  { %830 = vmatpush.msra.mxu2 %v1901_v63  ;;  %884 = vmatpush.msra.mxu3 %v1929_v20 }
  0xd2   :  { %907 = vmatpush.msrb.mxu0 %v714_v47  ;;  %v794_v3 = vand.u32 4294901760, %v793_v56  ;;  %v2048_v47 = vand.u32 4294901760, %v1019_v13 }
  0xd3   :  { %833 = vmatpush.msra.mxu2 %v1923_v18  ;;  %886 = vmatpush.msra.mxu3 %v1939_v36 }
  0xd4   :  { %911 = vmatpush.msrb.mxu0 %v720_v48  ;;  %795 = vmatpush.msra.mxu1 %v794_v3  ;;  %v2050_v48 = vand.u32 4294901760, %v1018_v43  ;;  %v1011_v3 = vld [vmem:[#allocation7 + $0x118] sm:$0xff] }
  0xd5   :  { %836 = vmatpush.msra.mxu2 %v1927_v19  ;;  %888 = vmatpush.msra.mxu3 %v691_v16 }
  0xd6   :  { %915 = vmatpush.msrb.mxu0 %v726_v49  ;;  %801 = vmatpush.msra.mxu1 %v800_v8  ;;  %v1017_v49 = vld [vmem:[#allocation7 + $0x148] sm:$0xff]  ;;  %v2117_v8 = vsub.f32 %v1015_v21, %v2104_v60 }
  0xd7   :  { %839 = vmatpush.msra.mxu2 %v1937_v35  ;;  %890 = vmatpush.msra.mxu3 %v693_v26 }
  0xd8   :  { %970 = vmatpush.msrb.mxu1 %v1845_v52  ;;  %919 = vmatpush.msrb.mxu0 %v732_v53  ;;  %v1398_v52 = vld [vmem:[#allocation8 + $0x1] ss:$0 sm:$0xff] }
  0xd9   :  { %842 = vmatpush.msra.mxu2 %v1947_v62  ;;  %892 = vmatpush.msra.mxu3 %v695_v51 }
  0xda   :  { %972 = vmatpush.msrb.mxu1 %v1847_v58  ;;  %923 = vmatpush.msrb.mxu0 %v738_v57 }
  0xdb   :  { %845 = vmatpush.msra.mxu2 %v1956_v54 }
  0xdc   :  { %974 = vmatpush.msrb.mxu1 %v1849_v59  ;;  %927 = vmatpush.msrb.mxu0 %v744_v41  ;;  %v2062_v41 = vand.u32 4294901760, %v1017_v49 }
  0xdd   :  { %848 = vmatpush.msra.mxu2 %v785_v55 }
  0xde   :  { %976 = vmatpush.msrb.mxu1 %v1851_v2  ;;  %931 = vmatpush.msrb.mxu0 %v750_v24  ;;  %v2068_v24 = vsub.f32 %v1019_v13, %v2048_v47  ;;  %v2080_v62 = vsub.f32 %v1017_v49, %v2062_v41 }
  0xdf   :  { %851 = vmatpush.msra.mxu2 %v791_v50 }
  0xe0   :  { %978 = vmatpush.msrb.mxu1 %v1853_v6  ;;  %935 = vmatpush.msrb.mxu0 %v756_v34  ;;  %v1023_v6 = vld [vmem:[#allocation7 + $0x178] sm:$0xff]  ;;  %v1106_v27 = vand.u32 4294901760, %v2080_v62 }
  0xe1   :  { %854 = vmatpush.msra.mxu2 %v797_v9  ;;  %v2040_v12 = vand.u32 4294901760, %v1023_v6 }
  0xe2   :  { %980 = vmatpush.msrb.mxu1 %v1855_v7  ;;  %939 = vmatpush.msrb.mxu0 %v762_v61  ;;  %v1022_v7 = vld [vmem:[#allocation7 + $0x170] sm:$0xff]  ;;  %v1094_v61 = vand.u32 4294901760, %v2068_v24 }
  0xe3   :  { %v2042_v29 = vand.u32 4294901760, %v1022_v7  ;;  %v2053_v30 = vsub.f32 %v1023_v6, %v2040_v12  ;;  %1028 = vmatpush.msrb.mxu2 %v2040_v12 }
  0xe4   :  { %982 = vmatpush.msrb.mxu1 %v1867_v31  ;;  %943 = vmatpush.msrb.mxu0 %v768_v45  ;;  %v2044_v31 = vand.u32 4294901760, %v1021_v11 }
  0xe5   :  { %v2056_v57 = vsub.f32 %v1022_v7, %v2042_v29  ;;  %v1070_v19 = vand.u32 4294901760, %v2053_v30  ;;  %1030 = vmatpush.msrb.mxu2 %v2042_v29  ;;  %v1107_v7 = vsub.f32 %v2080_v62, %v1106_v27 }
  0xe6   :  { %984 = vmatpush.msrb.mxu1 %v1878_v44  ;;  %947 = vmatpush.msrb.mxu0 %v774_v4  ;;  %v2059_v63 = vsub.f32 %v1021_v11, %v2044_v31 }
  0xe7   :  { %v1071_v54 = vsub.f32 %v2053_v30, %v1070_v19  ;;  %1032 = vmatpush.msrb.mxu2 %v2044_v31 }
  0xe8   :  { %986 = vmatpush.msrb.mxu1 %v1912_v42  ;;  %951 = vmatpush.msrb.mxu0 %v780_v0  ;;  %v1082_v34 = vand.u32 4294901760, %v2059_v63 }
  0xe9   :  { %v1072_v46 = vand.u32 4294901760, %v1071_v54  ;;  %1034 = vmatpush.msrb.mxu2 %v2046_v15  ;;  %v1009_v54 = vld [vmem:[#allocation7 + $0x108] sm:$0xff] }
  0xea   :  { %988 = vmatpush.msrb.mxu1 %v1914_v23  ;;  %955 = vmatpush.msrb.mxu0 %v786_v28  ;;  %v2065_v23 = vsub.f32 %v1020_v38, %v2046_v15  ;;  %v1083_v14 = vsub.f32 %v2059_v63, %v1082_v34  ;;  %v1012_v28 = vld [vmem:[#allocation7 + $0x120] sm:$0xff]  ;;  %v1118_v38 = vand.u32 4294901760, %v2117_v8 }
  0xeb   :  { %1073 = vmatpush.msrb.mxu3 %v1072_v46  ;;  %1036 = vmatpush.msrb.mxu2 %v2048_v47 }
  0xec   :  { %990 = vmatpush.msrb.mxu1 %v1920_v17  ;;  %959 = vmatpush.msrb.mxu0 %v792_v1  ;;  %v2071_v17 = vsub.f32 %v1018_v43, %v2050_v48  ;;  %v1084_v50 = vand.u32 4294901760, %v1083_v14  ;;  %v2106_v1 = vand.u32 4294901760, %v1014_v39  ;;  %v2136_v43 = vand.u32 4294901760, %v1011_v3 }
  0xed   :  { %1038 = vmatpush.msrb.mxu2 %v2050_v48  ;;  %v1119_v14 = vsub.f32 %v2117_v8, %v1118_v38 }
  0xee   :  { %992 = vmatpush.msrb.mxu1 %v1929_v20  ;;  %963 = vmatpush.msrb.mxu0 %v798_v22  ;;  %v1076_v20 = vand.u32 4294901760, %v2056_v57  ;;  %v1100_v33 = vand.u32 4294901760, %v2071_v17  ;;  %v2111_v22 = vand.u32 4294901760, %v1013_v25 }
  0xef   :  { %1040 = vmatpush.msrb.mxu2 %v2062_v41 }
  0xf0   :  { %994 = vmatpush.msrb.mxu1 %v1939_v36  ;;  %v1088_v36 = vand.u32 4294901760, %v2065_v23  ;;  %v1077_v4 = vsub.f32 %v2056_v57, %v1076_v20  ;;  %v1101_v56 = vsub.f32 %v2071_v17, %v1100_v33  ;;  %v2134_v13 = vsub.f32 %v1013_v25, %v2111_v22 }
  0xf2   :  { %996 = vmatpush.msrb.mxu1 %v691_v16  ;;  %v1089_v32 = vsub.f32 %v2065_v23, %v1088_v36  ;;  %v1078_v16 = vand.u32 4294901760, %v1077_v4  ;;  %v1108_v4 = vand.u32 4294901760, %v1107_v7 }
  0xf4   :  { %998 = vmatpush.msrb.mxu1 %v693_v26  ;;  %v1095_v26 = vsub.f32 %v2068_v24, %v1094_v61  ;;  %v1090_v10 = vand.u32 4294901760, %v1089_v32  ;;  %1079 = vmatpush.msrb.mxu3 %v1078_v16  ;;  %v2157_v32 = vsub.f32 %v1011_v3, %v2136_v43  ;;  %v2168_v16 = vand.u32 4294901760, %v1009_v54 }
  0xf6   :  { %1000 = vmatpush.msrb.mxu1 %v695_v51  ;;  %v2101_v51 = vand.u32 4294901760, %v1016_v37  ;;  %v1096_v6 = vand.u32 4294901760, %v1095_v26  ;;  %1085 = vmatpush.msrb.mxu3 %v1084_v50  ;;  %v2177_v50 = vsub.f32 %v1009_v54, %v2168_v16 }
  0xf8   :  { %v2114_v5 = vsub.f32 %v1016_v37, %v2101_v51  ;;  %1091 = vmatpush.msrb.mxu3 %v1090_v10  ;;  %1042 = vmatpush.msrb.mxu2 %v2101_v51 }
  0xfa   :  { %v1112_v11 = vand.u32 4294901760, %v2114_v5  ;;  %1097 = vmatpush.msrb.mxu3 %v1096_v6  ;;  %1044 = vmatpush.msrb.mxu2 %v2104_v60  ;;  %v1154_v6 = vand.u32 4294901760, %v2177_v50 }
  0xfc   :  { %1046 = vmatpush.msrb.mxu2 %v2106_v1 }
  0xfe   :  { %1048 = vmatpush.msrb.mxu2 %v2111_v22 }
 0x139   :  { %v496_v53 = vpop.f32.mrf.mxu0 }
 0x13b   :  { %v535_v18 = vpop.f32.mrf.mxu1 }
 0x13d   :  { %v442_v58 = vpop.f32.mrf.mxu3 }
 0x145   :  { %v341_v59 = vpop.f32.mrf.mxu2  ;;  %v641_v40 = vpop.f32.mrf.mxu3 }
 0x146   :  { %v342_v2 = vadd.f32 %v1398_v52, %v341_v59  ;;  %v2121_v52 = vsub.f32 %v1014_v39, %v2106_v1  ;;  %v1010_v59 = vld [vmem:[#allocation7 + $0x110] sm:$0xff] }
 0x147   :  { %v2140_v49 = vand.u32 4294901760, %v1010_v59 }
 0x148   :  { %v443_v44 = vadd.f32 %v442_v58, %v342_v2  ;;  %v2123_v58 = vand.u32 4294901760, %v1012_v28 }
 0x149   :  { %v2160_v21 = vsub.f32 %v1010_v59, %v2140_v49 }
 0x14a   :  { %v497_v42 = vadd.f32 %v496_v53, %v443_v44  ;;  %v1102_v53 = vand.u32 4294901760, %v1101_v56  ;;  %1050 = vmatpush.msrb.mxu2 %v2123_v58 }
 0x14b   :  { %v1148_v56 = vand.u32 4294901760, %v2160_v21 }
 0x14c   :  { %v536_v35 = vadd.f32 %v535_v18, %v497_v42  ;;  %v1113_v42 = vsub.f32 %v2114_v5, %v1112_v11  ;;  %v1124_v18 = vand.u32 4294901760, %v2121_v52  ;;  %1103 = vmatpush.msrb.mxu3 %v1102_v53  ;;  %1052 = vmatpush.msrb.mxu2 %v2136_v43 }
 0x14d   :  { %v604_v45 = vpop.f32.mrf.mxu2 }
 0x14e   :  { %v605_v0 = vadd.f32 %v604_v45, %v536_v35  ;;  %v2148_v35 = vsub.f32 %v1012_v28, %v2123_v58  ;;  %v1114_v39 = vand.u32 4294901760, %v1113_v42  ;;  %1109 = vmatpush.msrb.mxu3 %v1108_v4  ;;  %v1142_v28 = vand.u32 4294901760, %v2157_v32  ;;  %1054 = vmatpush.msrb.mxu2 %v2140_v49 }
 0x14f   :  { %v1155_v42 = vsub.f32 %v2177_v50, %v1154_v6 }
 0x150   :  { %v642_v55 = vadd.f32 %v641_v40, %v605_v0  ;;  %v1130_v0 = vand.u32 4294901760, %v2134_v13  ;;  %v1125_v40 = vsub.f32 %v2121_v52, %v1124_v18  ;;  %v1136_v46 = vand.u32 4294901760, %v2148_v35  ;;  %1115 = vmatpush.msrb.mxu3 %v1114_v39  ;;  %1056 = vmatpush.msrb.mxu2 %v2168_v16 }
 0x151   :  { %v1143_v59 = vsub.f32 %v2157_v32, %v1142_v28  ;;  %v1156_v54 = vand.u32 4294901760, %v1155_v42 }
 0x152   :  { %v644_v9 = vmax.f32 %v642_v55, 0.0  ;;  %v1120_v55 = vand.u32 4294901760, %v1119_v14  ;;  %v1131_v26 = vsub.f32 %v2134_v13, %v1130_v0  ;;  %v1137_v10 = vsub.f32 %v2148_v35, %v1136_v46 }
 0x153   :  { %v1144_v53 = vand.u32 4294901760, %v1143_v59 }
 0x154   :  { %v2125_v2 = vand.u32 4294901760, %v644_v9  ;;  %1121 = vmatpush.msrb.mxu3 %v1120_v55  ;;  %v1132_v3 = vand.u32 4294901760, %v1131_v26  ;;  %v1138_v7 = vand.u32 4294901760, %v1137_v10 }
 0x156   :  { %v698_v44 = vsub.f32 %v644_v9, %v2125_v2  ;;  %803 = vmatmul.f32.vlgmr.msra.gmra.mxu1 %v2125_v2  ;;  %v1126_v9 = vand.u32 4294901760, %v1125_v40 }
 0x157   :  { %1224 = vmatpush.msra.mxu1 %v2040_v12 }
 0x158   :  { %857 = vmatmul.f32.vlgmr.msra.gmra.mxu2 %v698_v44  ;;  %v699_v45 = vand.u32 4294901760, %v698_v44  ;;  %1127 = vmatpush.msrb.mxu3 %v1126_v9 }
 0x159   :  { %1226 = vmatpush.msra.mxu1 %v2042_v29 }
 0x15a   :  { %896 = vmatmul.f32.vlgmr.msra.gmra.mxu3 %v699_v45  ;;  %v700_v37 = vsub.f32 %v698_v44, %v699_v45  ;;  %v1149_v44 = vsub.f32 %v2160_v21, %v1148_v56 }
 0x15b   :  { %1228 = vmatpush.msra.mxu1 %v2044_v31  ;;  %1133 = vmatpush.msrb.mxu3 %v1132_v3 }
 0x15c   :  { %v701_v25 = vand.u32 4294901760, %v700_v37  ;;  %v1150_v45 = vand.u32 4294901760, %v1149_v44 }
 0x15d   :  { %1230 = vmatpush.msra.mxu1 %v2046_v15  ;;  %1139 = vmatpush.msrb.mxu3 %v1138_v7 }
 0x15e   :  { %702 = vmatmul.f32.vlgmr.msra.gmra.mxu0 %v701_v25  ;;  %1002 = vmatmul.f32.vlgmr.msrb.gmra.mxu1 %v2125_v2 }
 0x15f   :  { %1171 = vmatpush.msra.mxu0 %v2053_v30  ;;  %1232 = vmatpush.msra.mxu1 %v2048_v47 }
 0x160   :  { %1145 = vmatpush.msrb.mxu3 %v1144_v53 }
 0x161   :  { %1174 = vmatpush.msra.mxu0 %v2056_v57  ;;  %1234 = vmatpush.msra.mxu1 %v2050_v48 }
 0x162   :  { %1151 = vmatpush.msrb.mxu3 %v1150_v45 }
 0x163   :  { %1177 = vmatpush.msra.mxu0 %v2059_v63  ;;  %1236 = vmatpush.msra.mxu1 %v2062_v41 }
 0x164   :  { %1157 = vmatpush.msrb.mxu3 %v1156_v54 }
 0x165   :  { %1180 = vmatpush.msra.mxu0 %v2065_v23  ;;  %1238 = vmatpush.msra.mxu1 %v2101_v51 }
 0x166   :  { %965 = vmatmul.f32.vlgmr.msrb.gmra.mxu0 %v2125_v2  ;;  %v1008_v2 = vld [vmem:[#allocation7 + $0x100] sm:$0xff] }
 0x167   :  { %1183 = vmatpush.msra.mxu0 %v2068_v24  ;;  %1240 = vmatpush.msra.mxu1 %v2104_v60  ;;  %v1057_v4 = vand.u32 4294901760, %v1008_v2 }
 0x169   :  { %1186 = vmatpush.msra.mxu0 %v2071_v17  ;;  %1242 = vmatpush.msra.mxu1 %v2106_v1  ;;  %v1159_v14 = vsub.f32 %v1008_v2, %v1057_v4 }
 0x16a   :  { %1058 = vmatpush.msrb.mxu2 %v1057_v4 }
 0x16b   :  { %1189 = vmatpush.msra.mxu0 %v2080_v62  ;;  %1244 = vmatpush.msra.mxu1 %v2111_v22  ;;  %v1160_v37 = vand.u32 4294901760, %v1159_v14 }
 0x16c   :  { %1265 = vmatpush.msra.mxu2 %v1070_v19 }
 0x16d   :  { %1192 = vmatpush.msra.mxu0 %v2114_v5  ;;  %1246 = vmatpush.msra.mxu1 %v2123_v58  ;;  %v1161_v39 = vsub.f32 %v1159_v14, %v1160_v37 }
 0x16e   :  { %1269 = vmatpush.msra.mxu2 %v1076_v20 }
 0x16f   :  { %1195 = vmatpush.msra.mxu0 %v2117_v8  ;;  %1248 = vmatpush.msra.mxu1 %v2136_v43  ;;  %v1162_v40 = vand.u32 4294901760, %v1161_v39 }
 0x170   :  { %1273 = vmatpush.msra.mxu2 %v1082_v34 }
 0x171   :  { %1198 = vmatpush.msra.mxu0 %v2121_v52  ;;  %1250 = vmatpush.msra.mxu1 %v2140_v49 }
 0x172   :  { %1277 = vmatpush.msra.mxu2 %v1088_v36  ;;  %1163 = vmatpush.msrb.mxu3 %v1162_v40 }
 0x173   :  { %1201 = vmatpush.msra.mxu0 %v2134_v13  ;;  %1252 = vmatpush.msra.mxu1 %v2168_v16 }
 0x174   :  { %1332 = vmatpush.msra.mxu3 %v2040_v12  ;;  %1281 = vmatpush.msra.mxu2 %v1094_v61  ;;  %v1399_v12 = vld [vmem:[#allocation8 + $0x2] ss:$0 sm:$0xff] }
 0x175   :  { %1204 = vmatpush.msra.mxu0 %v2148_v35  ;;  %1254 = vmatpush.msra.mxu1 %v1057_v4 }
 0x176   :  { %1334 = vmatpush.msra.mxu3 %v2042_v29  ;;  %1285 = vmatpush.msra.mxu2 %v1100_v33  ;;  %v1400_v33 = vld [vmem:[#allocation8 + $0x3] ss:$0 sm:$0xff] }
 0x177   :  { %1207 = vmatpush.msra.mxu0 %v2157_v32 }
 0x178   :  { %1336 = vmatpush.msra.mxu3 %v2044_v31  ;;  %1289 = vmatpush.msra.mxu2 %v1106_v27 }
 0x179   :  { %1210 = vmatpush.msra.mxu0 %v2160_v21 }
 0x17a   :  { %1338 = vmatpush.msra.mxu3 %v2046_v15  ;;  %1293 = vmatpush.msra.mxu2 %v1112_v11 }
 0x17b   :  { %1213 = vmatpush.msra.mxu0 %v2177_v50 }
 0x17c   :  { %1340 = vmatpush.msra.mxu3 %v2048_v47  ;;  %1297 = vmatpush.msra.mxu2 %v1118_v38 }
 0x17d   :  { %1216 = vmatpush.msra.mxu0 %v1159_v14 }
 0x17e   :  { %1342 = vmatpush.msra.mxu3 %v2050_v48  ;;  %1301 = vmatpush.msra.mxu2 %v1124_v18 }
 0x180   :  { %1344 = vmatpush.msra.mxu3 %v2062_v41  ;;  %1305 = vmatpush.msra.mxu2 %v1130_v0 }
 0x182   :  { %1346 = vmatpush.msra.mxu3 %v2101_v51  ;;  %1309 = vmatpush.msra.mxu2 %v1136_v46 }
 0x184   :  { %1348 = vmatpush.msra.mxu3 %v2104_v60  ;;  %1313 = vmatpush.msra.mxu2 %v1142_v28 }
 0x186   :  { %1350 = vmatpush.msra.mxu3 %v2106_v1  ;;  %1317 = vmatpush.msra.mxu2 %v1148_v56 }
 0x188   :  { %1352 = vmatpush.msra.mxu3 %v2111_v22  ;;  %1321 = vmatpush.msra.mxu2 %v1154_v6 }
 0x18a   :  { %1354 = vmatpush.msra.mxu3 %v2123_v58  ;;  %1325 = vmatpush.msra.mxu2 %v1160_v37 }
 0x18c   :  { %1356 = vmatpush.msra.mxu3 %v2136_v43 }
 0x18e   :  { %1358 = vmatpush.msra.mxu3 %v2140_v49 }
 0x190   :  { %1360 = vmatpush.msra.mxu3 %v2168_v16 }
 0x192   :  { %1362 = vmatpush.msra.mxu3 %v1057_v4 }
 0x1d3   :  { %v804_v29 = vpop.f32.mrf.mxu1 }
 0x1db   :  { %v703_v31 = vpop.f32.mrf.mxu0  ;;  %v858_v48 = vpop.f32.mrf.mxu2 }
 0x1dc   :  { %v704_v15 = vadd.f32 %v1399_v12, %v703_v31  ;;  %v1003_v24 = vpop.f32.mrf.mxu1 }
 0x1dd   :  { %v897_v57 = vpop.f32.mrf.mxu3 }
 0x1de   :  { %v805_v47 = vadd.f32 %v804_v29, %v704_v15 }
 0x1e0   :  { %v859_v30 = vadd.f32 %v858_v48, %v805_v47 }
 0x1e2   :  { %v898_v63 = vadd.f32 %v897_v57, %v859_v30 }
 0x1e3   :  { %v966_v41 = vpop.f32.mrf.mxu0 }
 0x1e4   :  { %v967_v23 = vadd.f32 %v966_v41, %v898_v63 }
 0x1e6   :  { %v1004_v17 = vadd.f32 %v1003_v24, %v967_v23 }
 0x1e8   :  { %v1006_v19 = vmax.f32 %v1004_v17, 0.0 }
 0x1ea   :  { %v1059_v20 = vand.u32 4294901760, %v1006_v19 }
 0x1ec   :  { %v1060_v34 = vsub.f32 %v1006_v19, %v1059_v20  ;;  %1165 = vmatmul.f32.vlgmr.msrb.gmra.mxu3 %v1059_v20 }
 0x1ee   :  { %1219 = vmatmul.f32.vlgmr.msra.gmra.mxu0 %v1060_v34  ;;  %v1061_v36 = vand.u32 4294901760, %v1060_v34 }
 0x1f0   :  { %1258 = vmatmul.f32.vlgmr.msra.gmra.mxu1 %v1061_v36  ;;  %v1062_v61 = vsub.f32 %v1060_v34, %v1061_v36 }
 0x1f2   :  { %v1063_v62 = vand.u32 4294901760, %v1062_v61 }
 0x1f4   :  { %1064 = vmatmul.f32.vlgmr.msrb.gmra.mxu2 %v1063_v62  ;;  %1364 = vmatmul.f32.vlgmr.msra.gmra.mxu3 %v1059_v20 }
 0x1fc   :  { %1327 = vmatmul.f32.vlgmr.msra.gmra.mxu2 %v1059_v20 }
 0x26b   :  { %v1220_v22 = vpop.f32.mrf.mxu0 }
 0x26d   :  { %v1259_v8 = vpop.f32.mrf.mxu1 }
 0x26f   :  { %v1166_v27 = vpop.f32.mrf.mxu3 }
 0x277   :  { %v1065_v51 = vpop.f32.mrf.mxu2  ;;  %v1365_v38 = vpop.f32.mrf.mxu3 }
 0x278   :  { %v1066_v60 = vadd.f32 %v1400_v33, %v1065_v51 }
 0x27a   :  { %v1167_v1 = vadd.f32 %v1166_v27, %v1066_v60 }
 0x27c   :  { %v1221_v5 = vadd.f32 %v1220_v22, %v1167_v1 }
 0x27e   :  { %v1260_v52 = vadd.f32 %v1259_v8, %v1221_v5 }
 0x27f   :  { %v1328_v58 = vpop.f32.mrf.mxu2 }
 0x280   :  { %v1329_v11 = vadd.f32 %v1328_v58, %v1260_v52 }
 0x282   :  { %v1366_v13 = vadd.f32 %v1365_v38, %v1329_v11 }
 0x284   :  { %1368 = vst [vmem:[#allocation10] sm:$0xff] %v1366_v13 }
 0x285   :  { %1379 = dma.vmem_to_hbm [thread:$0]  %s1375_s3, 128, %s1377_s13, [#allocation4]  }
 0x286   :  { %1527 = dma.done.wait [#allocation4], 128  }
 0x287   :  { %1528 = vsyncadd [#allocation4], 4294967168 }
 0x288   :  { %1384 = vsyncpa [#allocation3], 1 }
 0x289   :  { %1385 = vsyncpa [#allocation6], 1 }
 0x28a   :  { %1386 = vsyncpa [#allocation9], 1 }
 0x28b   :  { %1387 = vsyncpa [#allocation4], 1 }

</bundles_post_ra>
